<compile_context>
chip_gen: v6e
topology: v6e:2x2x1
jax: 0.10.0
libtpu: 0.0.40
codegen_flags: <defaults>
</compile_context>

<pallas_src>
import functools

import jax
import jax.numpy as jnp
from jax.experimental import pallas as pl
from jax.experimental.pallas import tpu as pltpu

CHAR_SIZE = 32   # vocab size (len(chars)); small synthetic value
TEXT_LEN = 16    # sequence length (len(text)); small synthetic value
HIDDEN = 128     # fixed by the module (Conv1d -> 128 channels)
BATCH = 2


def nca_llm_kernel(x_ref, g_ref, emb_ref, fw_ref, fb_ref, w1_ref, b1_ref,
                   w2_ref, logits_ref, out_ref, *, bc):
    """One grid step processes a whole batch chunk of `bc` sequences."""
    T, C, H = TEXT_LEN, CHAR_SIZE, HIDDEN
    R = bc * T                                   # stacked (batch, position) rows

    # --- embedding lookup: one-hot rows @ embedding table (MXU) --------------
    ids = x_ref[...]                                            # (R, 1) int32
    col = jax.lax.broadcasted_iota(jnp.int32, (R, C), 1)
    one_hot = (ids == col).astype(jnp.float32)                  # (R, C)
    emb = jnp.dot(one_hot, emb_ref[...],
                  preferred_element_type=jnp.float32)           # (R, C)

    # --- depthwise Conv1d(k=3, padding=1, groups=TEXT_LEN) along CHAR axis ---
    # Neighbours via lane shifts; zero padding is an explicit zero column.
    zero_col = jnp.zeros((R, 1), jnp.float32)
    left = jnp.concatenate([zero_col, emb[:, :C - 1]], axis=1)   # emb[:, c-1]
    right = jnp.concatenate([emb[:, 1:], zero_col], axis=1)      # emb[:, c+1]
    fw = fw_ref[...]                                             # (R, 3), row (b,t) -> fw[t]
    filtered = (fw[:, 0:1] * left + fw[:, 1:2] * emb
                + fw[:, 2:3] * right + fb_ref[...])              # (R, C)

    # --- 1x1 conv stack with HIDDEN=128 on the lane axis ---------------------
    # h[(b,c), j] = sum_t filtered[b,t,c] * w1[j,t] + b1[j]   -> lane-dense (bc*C, 128)
    ft = jnp.transpose(filtered.reshape(bc, T, C), (0, 2, 1)).reshape(bc * C, T)
    h = jax.lax.dot_general(ft, w1_ref[...], (((1,), (1,)), ((), ())),
                            preferred_element_type=jnp.float32)  # (bc*C, H)
    h = jnp.maximum(h + b1_ref[...], 0.0)                        # bias + ReLU
    lg = jax.lax.dot_general(h, w2_ref[...], (((1,), (1,)), ((), ())),
                             preferred_element_type=jnp.float32) # (bc*C, T)
    logits = jnp.transpose(lg.reshape(bc, C, T), (0, 2, 1))      # (bc, T, C)
    logits_ref[...] = logits

    # --- live mask: max softmax prob = 1 / sum(exp(logits - max)) ------------
    m = jnp.max(logits, axis=-1, keepdims=True)                  # (bc, T, 1)
    s = jnp.sum(jnp.exp(logits - m), axis=-1)                    # (bc, T)
    live = s < jnp.float32(1.0 / 0.9)                            # max prob > 0.9

    # --- multinomial(softmax(logits), 1) via Gumbel-max ----------------------
    z = logits + g_ref[...]                                      # (bc, T, C)
    zmax = jnp.max(z, axis=-1, keepdims=True)
    col3 = jax.lax.broadcasted_iota(jnp.int32, (bc, T, C), 2)
    samp = jnp.min(jnp.where(z >= zmax, col3, jnp.int32(C)), axis=-1)  # (bc, T)

    # single dense store of the whole batch chunk
    out_ref[...] = jnp.where(live, samp, 0).astype(jnp.int32)


def nca_llm_forward(x, params, gumbel):
    emb_table, fw, fb, w1, b1, w2 = params
    B, T = x.shape
    assert T == TEXT_LEN
    C, H = CHAR_SIZE, HIDDEN

    # Whole batch in a single grid step (sublane-stacked).  For large B this
    # generalises to batch chunks along this leading "parallel" grid axis.
    bc = B
    num_chunks = B // bc

    x2 = x.astype(jnp.int32).reshape(B * T, 1)
    fw_t = jnp.tile(fw, (bc, 1))                      # (bc*T, 3): row (b,t) -> fw[t]
    fb_t = jnp.tile(fb.reshape(T, 1), (bc, 1))        # (bc*T, 1)
    b1_2 = b1.reshape(1, H)

    grid_spec = pl.GridSpec(
        grid=(num_chunks,),
        in_specs=[
            pl.BlockSpec((bc * T, 1), lambda i: (i, 0)),      # token ids
            pl.BlockSpec((bc, T, C), lambda i: (i, 0, 0)),    # gumbel noise
            pl.BlockSpec((C, C), lambda i: (0, 0)),           # embedding table
            pl.BlockSpec((bc * T, 3), lambda i: (0, 0)),      # depthwise filter weight
            pl.BlockSpec((bc * T, 1), lambda i: (0, 0)),      # depthwise filter bias
            pl.BlockSpec((H, T), lambda i: (0, 0)),           # seq[0] weight (128, T)
            pl.BlockSpec((1, H), lambda i: (0, 0)),           # seq[0] bias
            pl.BlockSpec((T, H), lambda i: (0, 0)),           # seq[2] weight (T, 128)
        ],
        out_specs=(
            pl.BlockSpec((bc, T, C), lambda i: (i, 0, 0)),    # logits
            pl.BlockSpec((bc, T), lambda i: (i, 0)),          # gated samples
        ),
    )

    logits, out = pl.pallas_call(
        functools.partial(nca_llm_kernel, bc=bc),
        grid_spec=grid_spec,
        out_shape=(
            jax.ShapeDtypeStruct((B, T, C), jnp.float32),
            jax.ShapeDtypeStruct((B, T), jnp.int32),
        ),
        compiler_params=pltpu.CompilerParams(
            dimension_semantics=("parallel",)),
    )(x2, gumbel, emb_table, fw_t, fb_t, w1, b1_2, w2)
    return logits, out


def reference_forward(x, params, gumbel):
    """Plain-JAX reference (same math, same gumbel noise)."""
    emb_table, fw, fb, w1, b1, w2 = params
    emb = emb_table[x]                                                  # (B, T, C)
    left = jnp.pad(emb, ((0, 0), (0, 0), (1, 0)))[:, :, :CHAR_SIZE]     # emb[:, :, c-1]
    right = jnp.pad(emb, ((0, 0), (0, 0), (0, 1)))[:, :, 1:]            # emb[:, :, c+1]
    filtered = (fw[None, :, 0:1] * left + fw[None, :, 1:2] * emb
                + fw[None, :, 2:3] * right + fb[None, :, None])
    h = jnp.einsum('ht,btc->bhc', w1, filtered) + b1[None, :, None]
    h = jnp.maximum(h, 0.0)
    logits = jnp.einsum('th,bhc->btc', w2, h)
    probs = jax.nn.softmax(logits, axis=-1)
    samp = jnp.argmax(logits + gumbel, axis=-1)
    live = jnp.max(probs, axis=-1) > 0.9
    out = jnp.where(live, samp, 0).astype(jnp.int32)
    return logits, out


if __name__ == "__main__":
    key = jax.random.PRNGKey(0)
    ks = jax.random.split(key, 8)
    x = jax.random.randint(ks[0], (BATCH, TEXT_LEN), 0, CHAR_SIZE, dtype=jnp.int32)

    emb_table = jax.random.normal(ks[1], (CHAR_SIZE, CHAR_SIZE), jnp.float32)
    fw = jax.random.normal(ks[2], (TEXT_LEN, 3), jnp.float32) / jnp.sqrt(3.0)
    fb = jax.random.normal(ks[3], (TEXT_LEN,), jnp.float32) * 0.1
    w1 = jax.random.normal(ks[4], (HIDDEN, TEXT_LEN), jnp.float32) / jnp.sqrt(float(TEXT_LEN))
    b1 = jax.random.normal(ks[5], (HIDDEN,), jnp.float32) * 0.1
    # NOTE: the PyTorch __init__ zero-inits seq[2].weight (all logits 0, live mask all
    # False).  We use scaled-up random values so the softmax / sampling / masking paths
    # are exercised non-trivially.  Set w2 = zeros to match __init__ exactly.
    w2 = jax.random.normal(ks[6], (TEXT_LEN, HIDDEN), jnp.float32) * (8.0 / jnp.sqrt(float(HIDDEN)))
    params = (emb_table, fw, fb, w1, b1, w2)

    gumbel = jax.random.gumbel(ks[7], (BATCH, TEXT_LEN, CHAR_SIZE), dtype=jnp.float32)

    logits, output = nca_llm_forward(x, params, gumbel)
    jax.block_until_ready((logits, output))

    assert logits.shape == (BATCH, TEXT_LEN, CHAR_SIZE)
    assert output.shape == (BATCH, TEXT_LEN)

    ref_logits, _ = reference_forward(x, params, gumbel)
    assert jnp.allclose(logits, ref_logits, atol=2e-2, rtol=2e-2), "logits mismatch vs reference"

    # Sampling / live-mask self-consistency against the kernel's own logits.
    expect_samp = jnp.argmax(logits + gumbel, axis=-1)
    expect_live = jnp.max(jax.nn.softmax(logits, axis=-1), axis=-1) > 0.9
    expect_out = jnp.where(expect_live, expect_samp, 0).astype(jnp.int32)
    assert jnp.array_equal(output, expect_out), "sampled output mismatch"

    print("KERNEL_OK")
</pallas_src>

<mosaic_0001>
module attributes {stable_mosaic.version = 11 : i64} {
  func.func @nca_llm_kernel(%arg0: i32, %arg1: memref<32x1xi32, #tpu.memory_space<vmem>>, %arg2: memref<2x16x32xf32, #tpu.memory_space<vmem>>, %arg3: memref<32x32xf32, #tpu.memory_space<vmem>>, %arg4: memref<32x3xf32, #tpu.memory_space<vmem>>, %arg5: memref<32x1xf32, #tpu.memory_space<vmem>>, %arg6: memref<128x16xf32, #tpu.memory_space<vmem>>, %arg7: memref<1x128xf32, #tpu.memory_space<vmem>>, %arg8: memref<16x128xf32, #tpu.memory_space<vmem>>, %arg9: memref<2x16x32xf32, #tpu.memory_space<vmem>>, %arg10: memref<2x16xi32, #tpu.memory_space<vmem>>) attributes {dimension_semantics = [#tpu.dimension_semantics<parallel>], iteration_bounds = array<i64: 1>, scalar_prefetch = 0 : i64, scratch_operands = 0 : i64, tpu.core_type = #tpu.core_type<tc>, window_params = [{transform_indices = @transform_0, window_bounds = array<i64: 32, 1>}, {transform_indices = @transform_1, window_bounds = array<i64: 2, 16, 32>}, {pipeline_mode = #tpu.pipeline_mode<synchronous>, transform_indices = @transform_2, window_bounds = array<i64: 32, 32>}, {pipeline_mode = #tpu.pipeline_mode<synchronous>, transform_indices = @transform_3, window_bounds = array<i64: 32, 3>}, {pipeline_mode = #tpu.pipeline_mode<synchronous>, transform_indices = @transform_4, window_bounds = array<i64: 32, 1>}, {pipeline_mode = #tpu.pipeline_mode<synchronous>, transform_indices = @transform_5, window_bounds = array<i64: 128, 16>}, {pipeline_mode = #tpu.pipeline_mode<synchronous>, transform_indices = @transform_6, window_bounds = array<i64: 1, 128>}, {pipeline_mode = #tpu.pipeline_mode<synchronous>, transform_indices = @transform_7, window_bounds = array<i64: 16, 128>}, {transform_indices = @transform_8, window_bounds = array<i64: 2, 16, 32>}, {transform_indices = @transform_9, window_bounds = array<i64: 2, 16>}]} {
    %c0 = arith.constant 0 : index
    %c0_0 = arith.constant 0 : index
    %0 = vector.load %arg1[%c0, %c0_0] : memref<32x1xi32, #tpu.memory_space<vmem>>, vector<32x1xi32>
    %1 = tpu.iota {dimensions = array<i32: 1>} : vector<32x32xi32>
    %2 = vector.broadcast %0 : vector<32x1xi32> to vector<32x32xi32>
    %3 = arith.cmpi eq, %2, %1 : vector<32x32xi32>
    %4 = arith.extui %3 : vector<32x32xi1> to vector<32x32xi32>
    %5 = arith.sitofp %4 : vector<32x32xi32> to vector<32x32xf32>
    %c0_1 = arith.constant 0 : index
    %c0_2 = arith.constant 0 : index
    %6 = vector.load %arg3[%c0_1, %c0_2] : memref<32x32xf32, #tpu.memory_space<vmem>>, vector<32x32xf32>
    %cst = arith.constant dense<0.000000e+00> : vector<32x32xf32>
    %7 = tpu.matmul %5, %6, %cst {dimension_numbers = #tpu.dot_dimension_numbers<[1], [0], [0], [1], [0, 0, 1, 1], [], []>} : vector<32x32xf32>, vector<32x32xf32>, vector<32x32xf32> -> vector<32x32xf32>
    %cst_3 = arith.constant 0.000000e+00 : f32
    %8 = vector.broadcast %cst_3 : f32 to vector<32x1xf32>
    %9 = vector.extract_strided_slice %7 {offsets = [0, 0], sizes = [32, 31], strides = [1, 1]} : vector<32x32xf32> to vector<32x31xf32>
    %10 = tpu.concatenate %8, %9 in 1 : vector<32x1xf32>, vector<32x31xf32> -> vector<32x32xf32>
    %11 = vector.extract_strided_slice %7 {offsets = [0, 1], sizes = [32, 31], strides = [1, 1]} : vector<32x32xf32> to vector<32x31xf32>
    %12 = tpu.concatenate %11, %8 in 1 : vector<32x31xf32>, vector<32x1xf32> -> vector<32x32xf32>
    %c0_4 = arith.constant 0 : index
    %c0_5 = arith.constant 0 : index
    %13 = vector.load %arg4[%c0_4, %c0_5] : memref<32x3xf32, #tpu.memory_space<vmem>>, vector<32x3xf32>
    %14 = vector.extract_strided_slice %13 {offsets = [0, 0], sizes = [32, 1], strides = [1, 1]} : vector<32x3xf32> to vector<32x1xf32>
    %15 = vector.broadcast %14 : vector<32x1xf32> to vector<32x32xf32>
    %16 = arith.mulf %15, %10 : vector<32x32xf32>
    %17 = vector.extract_strided_slice %13 {offsets = [0, 1], sizes = [32, 1], strides = [1, 1]} : vector<32x3xf32> to vector<32x1xf32>
    %18 = vector.broadcast %17 : vector<32x1xf32> to vector<32x32xf32>
    %19 = arith.mulf %18, %7 : vector<32x32xf32>
    %20 = arith.addf %16, %19 : vector<32x32xf32>
    %21 = vector.extract_strided_slice %13 {offsets = [0, 2], sizes = [32, 1], strides = [1, 1]} : vector<32x3xf32> to vector<32x1xf32>
    %22 = vector.broadcast %21 : vector<32x1xf32> to vector<32x32xf32>
    %23 = arith.mulf %22, %12 : vector<32x32xf32>
    %24 = arith.addf %20, %23 : vector<32x32xf32>
    %c0_6 = arith.constant 0 : index
    %c0_7 = arith.constant 0 : index
    %25 = vector.load %arg5[%c0_6, %c0_7] : memref<32x1xf32, #tpu.memory_space<vmem>>, vector<32x1xf32>
    %26 = vector.broadcast %25 : vector<32x1xf32> to vector<32x32xf32>
    %27 = arith.addf %24, %26 : vector<32x32xf32>
    %28 = vector.shape_cast %27 : vector<32x32xf32> to vector<2x16x32xf32>
    %29 = tpu.transpose %28, [0, 2, 1] : vector<2x16x32xf32> -> vector<2x32x16xf32>
    %30 = vector.shape_cast %29 : vector<2x32x16xf32> to vector<64x16xf32>
    %c0_8 = arith.constant 0 : index
    %c0_9 = arith.constant 0 : index
    %31 = vector.load %arg6[%c0_8, %c0_9] : memref<128x16xf32, #tpu.memory_space<vmem>>, vector<128x16xf32>
    %cst_10 = arith.constant dense<0.000000e+00> : vector<64x128xf32>
    %32 = tpu.matmul %30, %31, %cst_10 {dimension_numbers = #tpu.dot_dimension_numbers<[1], [1], [0], [0], [0, 0, 1, 0], [], []>} : vector<64x16xf32>, vector<128x16xf32>, vector<64x128xf32> -> vector<64x128xf32>
    %c0_11 = arith.constant 0 : index
    %c0_12 = arith.constant 0 : index
    %33 = vector.load %arg7[%c0_11, %c0_12] : memref<1x128xf32, #tpu.memory_space<vmem>>, vector<1x128xf32>
    %34 = vector.broadcast %33 : vector<1x128xf32> to vector<64x128xf32>
    %35 = arith.addf %32, %34 : vector<64x128xf32>
    %cst_13 = arith.constant 0.000000e+00 : f32
    %36 = vector.broadcast %cst_13 : f32 to vector<64x128xf32>
    %37 = arith.maximumf %35, %36 : vector<64x128xf32>
    %c0_14 = arith.constant 0 : index
    %c0_15 = arith.constant 0 : index
    %38 = vector.load %arg8[%c0_14, %c0_15] : memref<16x128xf32, #tpu.memory_space<vmem>>, vector<16x128xf32>
    %cst_16 = arith.constant dense<0.000000e+00> : vector<64x16xf32>
    %39 = tpu.matmul %37, %38, %cst_16 {dimension_numbers = #tpu.dot_dimension_numbers<[1], [1], [0], [0], [0, 0, 1, 0], [], []>} : vector<64x128xf32>, vector<16x128xf32>, vector<64x16xf32> -> vector<64x16xf32>
    %40 = vector.shape_cast %39 : vector<64x16xf32> to vector<2x32x16xf32>
    %41 = tpu.transpose %40, [0, 2, 1] : vector<2x32x16xf32> -> vector<2x16x32xf32>
    %c0_17 = arith.constant 0 : index
    %c0_18 = arith.constant 0 : index
    %c0_19 = arith.constant 0 : index
    %42 = vector.load %arg9[%c0_17, %c0_18, %c0_19] : memref<2x16x32xf32, #tpu.memory_space<vmem>>, vector<2x16x32xf32>
    tpu.vector_store %arg9[%c0_17, %c0_18, %c0_19], %41 {strides = array<i32>} : memref<2x16x32xf32, #tpu.memory_space<vmem>>, vector<2x16x32xf32>,
    %cst_20 = arith.constant dense<0xFF800000> : vector<2x16xf32>
    %43 = vector.multi_reduction <maximumf>, %41, %cst_20 [2] : vector<2x16x32xf32> to vector<2x16xf32>
    %44 = vector.shape_cast %43 : vector<2x16xf32> to vector<2x16x1xf32>
    %45 = vector.broadcast %44 : vector<2x16x1xf32> to vector<2x16x32xf32>
    %46 = arith.subf %41, %45 : vector<2x16x32xf32>
    %47 = math.exp %46 : vector<2x16x32xf32>
    %cst_21 = arith.constant dense<0.000000e+00> : vector<2x16xf32>
    %48 = vector.multi_reduction <add>, %47, %cst_21 [2] : vector<2x16x32xf32> to vector<2x16xf32>
    %cst_22 = arith.constant 1.11111116 : f32
    %49 = vector.broadcast %cst_22 : f32 to vector<2x16xf32>
    %50 = arith.cmpf olt, %48, %49 : vector<2x16xf32>
    %c0_23 = arith.constant 0 : index
    %c0_24 = arith.constant 0 : index
    %c0_25 = arith.constant 0 : index
    %51 = vector.load %arg2[%c0_23, %c0_24, %c0_25] : memref<2x16x32xf32, #tpu.memory_space<vmem>>, vector<2x16x32xf32>
    %52 = arith.addf %41, %51 : vector<2x16x32xf32>
    %cst_26 = arith.constant dense<0xFF800000> : vector<2x16xf32>
    %53 = vector.multi_reduction <maximumf>, %52, %cst_26 [2] : vector<2x16x32xf32> to vector<2x16xf32>
    %54 = vector.shape_cast %53 : vector<2x16xf32> to vector<2x16x1xf32>
    %55 = tpu.iota {dimensions = array<i32: 2>} : vector<2x16x32xi32>
    %56 = vector.broadcast %54 : vector<2x16x1xf32> to vector<2x16x32xf32>
    %57 = arith.cmpf oge, %52, %56 : vector<2x16x32xf32>
    %c32_i32 = arith.constant 32 : i32
    %58 = vector.broadcast %c32_i32 : i32 to vector<2x16x32xi32>
    %59 = arith.select %57, %55, %58 : vector<2x16x32xi1>, vector<2x16x32xi32>
    %cst_27 = arith.constant dense<2147483647> : vector<2x16xi32>
    %60 = vector.multi_reduction <minsi>, %59, %cst_27 [2] : vector<2x16x32xi32> to vector<2x16xi32>
    %c0_i32 = arith.constant 0 : i32
    %61 = vector.broadcast %c0_i32 : i32 to vector<2x16xi32>
    %62 = arith.select %50, %60, %61 : vector<2x16xi1>, vector<2x16xi32>
    %c0_28 = arith.constant 0 : index
    %c0_29 = arith.constant 0 : index
    %63 = vector.load %arg10[%c0_28, %c0_29] : memref<2x16xi32, #tpu.memory_space<vmem>>, vector<2x16xi32>
    tpu.vector_store %arg10[%c0_28, %c0_29], %62 {strides = array<i32>} : memref<2x16xi32, #tpu.memory_space<vmem>>, vector<2x16xi32>,
    return
  }
  func.func @transform_0(%arg0: i32) -> (i32, i32) {
    %c0_i32 = arith.constant 0 : i32
    %c0_i32_0 = arith.constant 0 : i32
    return %arg0, %c0_i32 : i32, i32
  }
  func.func @transform_1(%arg0: i32) -> (i32, i32, i32) {
    %c0_i32 = arith.constant 0 : i32
    %c0_i32_0 = arith.constant 0 : i32
    %c0_i32_1 = arith.constant 0 : i32
    return %arg0, %c0_i32, %c0_i32_0 : i32, i32, i32
  }
  func.func @transform_2(%arg0: i32) -> (i32, i32) {
    %c0_i32 = arith.constant 0 : i32
    %c0_i32_0 = arith.constant 0 : i32
    %c0_i32_1 = arith.constant 0 : i32
    return %c0_i32, %c0_i32_0 : i32, i32
  }
  func.func @transform_3(%arg0: i32) -> (i32, i32) {
    %c0_i32 = arith.constant 0 : i32
    %c0_i32_0 = arith.constant 0 : i32
    %c0_i32_1 = arith.constant 0 : i32
    return %c0_i32, %c0_i32_0 : i32, i32
  }
  func.func @transform_4(%arg0: i32) -> (i32, i32) {
    %c0_i32 = arith.constant 0 : i32
    %c0_i32_0 = arith.constant 0 : i32
    %c0_i32_1 = arith.constant 0 : i32
    return %c0_i32, %c0_i32_0 : i32, i32
  }
  func.func @transform_5(%arg0: i32) -> (i32, i32) {
    %c0_i32 = arith.constant 0 : i32
    %c0_i32_0 = arith.constant 0 : i32
    %c0_i32_1 = arith.constant 0 : i32
    return %c0_i32, %c0_i32_0 : i32, i32
  }
  func.func @transform_6(%arg0: i32) -> (i32, i32) {
    %c0_i32 = arith.constant 0 : i32
    %c0_i32_0 = arith.constant 0 : i32
    %c0_i32_1 = arith.constant 0 : i32
    return %c0_i32, %c0_i32_0 : i32, i32
  }
  func.func @transform_7(%arg0: i32) -> (i32, i32) {
    %c0_i32 = arith.constant 0 : i32
    %c0_i32_0 = arith.constant 0 : i32
    %c0_i32_1 = arith.constant 0 : i32
    return %c0_i32, %c0_i32_0 : i32, i32
  }
  func.func @transform_8(%arg0: i32) -> (i32, i32, i32) {
    %c0_i32 = arith.constant 0 : i32
    %c0_i32_0 = arith.constant 0 : i32
    %c0_i32_1 = arith.constant 0 : i32
    return %arg0, %c0_i32, %c0_i32_0 : i32, i32, i32
  }
  func.func @transform_9(%arg0: i32) -> (i32, i32) {
    %c0_i32 = arith.constant 0 : i32
    %c0_i32_0 = arith.constant 0 : i32
    return %arg0, %c0_i32 : i32, i32
  }
}

</mosaic_0001>

<bundles_post_ra>
// kernel: tpu_custom_call.1
= control target key start
LH: loop header
LB: loop body
LE: loop exit
PB: predicated region body
PF: predicated region fallthrough
CT: control target
= control target key end

     0   :  { %15 = vsyncpa [#allocation3], 0  ;;  %v1162_v2 = vmov 0   ;;  %s1459_s0 = inlined_call_operand.vmem [shape: s32[32,1], index: 0, kind: input, shape index: {}]   ;;  %s1460_s1 = inlined_call_operand.vmem [shape: f32[2,16,32], index: 1, kind: input, shape index: {}]   ;;  %s1461_s2 = inlined_call_operand.vmem [shape: f32[32,32], index: 2, kind: input, shape index: {}]   ;;  %s1462_s3 = inlined_call_operand.vmem [shape: f32[32,3], index: 3, kind: input, shape index: {}]   ;;  %s1463_s4 = inlined_call_operand.vmem [shape: f32[32,1], index: 4, kind: input, shape index: {}]   ;;  %s1464_s5 = inlined_call_operand.vmem [shape: f32[128,16], index: 5, kind: input, shape index: {}]   ;;  %s1465_s6 = inlined_call_operand.vmem [shape: f32[1,128], index: 6, kind: input, shape index: {}]   ;;  %s1466_s7 = inlined_call_operand.vmem [shape: f32[16,128], index: 7, kind: input, shape index: {}]   ;;  %s1467_s8 = inlined_call_operand.hbm [shape: f32[2,16,32], index: 8, kind: output, shape index: {0}]   ;;  %s1468_s9 = inlined_call_operand.hbm [shape: s32[2,16], index: 9, kind: output, shape index: {1}]  }
   0x1   :  { %v33_v0 = vld [vmem:[%s1459_s0] sm:$0xff]  ;;  %v35_v1 = vld [vmem:[%s1459_s0 + $0x10] sm:$0xff]  ;;  %1100 = vset.pattern.permute.xlu0 %v1162_v2  ;;  %1101 = vset.pattern.permute.xlu1 %v1162_v2  ;;  %v66_v3 = vld [vmem:[%s1461_s2 + $0x18] sm:$0xff] }
   0x2   :  { %40 = vperm.xlu0 %1100, %v33_v0   ;;  %46 = vperm.xlu1 %1101, %v35_v1   ;;  %v65_v4 = vld [vmem:[%s1461_s2 + $0x10] sm:$0xff] }
   0x3   :  { %16 = vsyncpa [#allocation5], 0  ;;  %v34_v5 = vld [vmem:[%s1459_s0 + $0x8] sm:$0xff]  ;;  %v36_v6 = vld [vmem:[%s1459_s0 + $0x18] sm:$0xff]  ;;  %1016 = vmatprep.subr.mxu0 %v66_v3  ;;  %v1163_v10 = vmov 2   ;;  %v1164_v11 = vmov 1   ;;  %v37_v17 = vlaneseq }
   0x4   :  { %1017 = vmatpush3.msra.mxu0 %v66_v3  ;;  %v64_v7 = vld [vmem:[%s1461_s2 + $0x8] sm:$0xff]  ;;  %v63_v8 = vld [vmem:[%s1461_s2] sm:$0xff]  ;;  %v205_v13 = vld [vmem:[%s1462_s3 + $0x10] sm:$0xff]  ;;  %vm67_vm0 = vcmask 261120   ;;  %v1165_v21 = vmov 0.0   ;;  %s1167_s14 = smov 1  }
   0x5   :  { %1018 = vmatprep.subr.mxu0 %v65_v4  ;;  %v203_v9 = vld [vmem:[%s1462_s3] sm:$0xff]  ;;  %v204_v12 = vld [vmem:[%s1462_s3 + $0x8] sm:$0xff]  ;;  %v206_v14 = vld [vmem:[%s1462_s3 + $0x18] sm:$0xff]  ;;  %v1265_v18 = vand.u32 127, %v37_v17  ;;  %s1166_s3 = smov 127   ;;  %vm394_vm5 = vcmask 130048  }
   0x6   :  { %43 = vperm.xlu0 %1100, %v34_v5   ;;  %49 = vperm.xlu1 %1101, %v36_v6   ;;  %v280_v15 = vld [vmem:[%s1463_s4 + $0x8] sm:$0xff]  ;;  %v279_v16 = vld [vmem:[%s1463_s4] sm:$0xff]  ;;  %v281_v32 = vld [vmem:[%s1463_s4 + $0x10] sm:$0xff]  ;;  %vm181_vm6 = vcmask 7168   ;;  %vm198_vm7 = vcmask 252928  }
   0x7   :  { %1019 = vmatpush3.msra.mxu0 %v65_v4  ;;  %v282_v33 = vld [vmem:[%s1463_s4 + $0x18] sm:$0xff]  ;;  %v385_v35 = vld [vmem:[%s1464_s5 + $0x70] sm:$0xff]  ;;  %v384_v36 = vld [vmem:[%s1464_s5 + $0x68] sm:$0xff] }
   0x8   :  { %1020 = vmatprep.subr.mxu0 %v64_v7  ;;  %v386_v34 = vld [vmem:[%s1464_s5 + $0x78] sm:$0xff]  ;;  %v383_v37 = vld [vmem:[%s1464_s5 + $0x60] sm:$0xff]  ;;  %v381_v39 = vld [vmem:[%s1464_s5 + $0x50] sm:$0xff] }
   0x9   :  { %1021 = vmatpush3.msra.mxu0 %v64_v7  ;;  %1030 = vmatprep.subr.msk.mxu1 %vm394_vm5, %v386_v34  ;;  %v382_v38 = vld [vmem:[%s1464_s5 + $0x58] sm:$0xff]  ;;  %v380_v40 = vld [vmem:[%s1464_s5 + $0x48] sm:$0xff]  ;;  %v379_v41 = vld [vmem:[%s1464_s5 + $0x40] sm:$0xff] }
   0xa   :  { %1022 = vmatprep.subr.mxu0 %v63_v8  ;;  %1103 = vset.pattern.permute.xlu0 %v1163_v10  ;;  %v378_v42 = vld [vmem:[%s1464_s5 + $0x38] sm:$0xff]  ;;  %v377_v43 = vld [vmem:[%s1464_s5 + $0x30] sm:$0xff]  ;;  %v376_v44 = vld [vmem:[%s1464_s5 + $0x28] sm:$0xff] }
   0xb   :  { %1023 = vmatpush3.msra.mxu0 %v63_v8  ;;  %1102 = vset.pattern.permute.xlu1 %v1164_v11  ;;  %v375_v45 = vld [vmem:[%s1464_s5 + $0x20] sm:$0xff]  ;;  %v374_v46 = vld [vmem:[%s1464_s5 + $0x18] sm:$0xff]  ;;  %v373_v47 = vld [vmem:[%s1464_s5 + $0x10] sm:$0xff] }
   0xc   :  { %256 = vperm.xlu0 %1103, %v203_v9   ;;  %232 = vperm.xlu1 %1102, %v203_v9   ;;  %v372_v48 = vld [vmem:[%s1464_s5 + $0x8] sm:$0xff] }
   0xd   :  { %1031 = vmatpush3.xpose.msk.msra.mxu1 %vm394_vm5, %v386_v34 }
   0xe   :  { %1032 = vmatprep.subr.msk.mxu1 %vm394_vm5, %v385_v35 }
  0x10   :  { %1106 = vset.pattern.permute.xlu0 %v1164_v11  ;;  %236 = vperm.xlu1 %1102, %v204_v12  }
  0x11   :  { %240 = vperm.xlu0 %1106, %v205_v13   ;;  %1033 = vmatpush3.xpose.msk.msra.mxu1 %vm394_vm5, %v385_v35 }
  0x12   :  { %1034 = vmatprep.subr.msk.mxu1 %vm394_vm5, %v384_v36 }
  0x14   :  { %1104 = vset.pattern.permute.xlu1 %v1163_v10 }
  0x15   :  { %244 = vperm.xlu0 %1106, %v206_v14   ;;  %260 = vperm.xlu1 %1104, %v204_v12  }
  0x16   :  { %1035 = vmatpush3.xpose.msk.msra.mxu1 %vm394_vm5, %v384_v36 }
  0x17   :  { %1036 = vmatprep.subr.msk.mxu1 %vm394_vm5, %v383_v37 }
  0x19   :  { %1105 = vset.pattern.permute.xlu1 %v1162_v2  ;;  %1107 = vset.pattern.permute.xlu0 %v1162_v2 }
  0x1a   :  { %219 = vperm.xlu1 %1105, %v205_v13   ;;  %209 = vperm.xlu0 %1107, %v203_v9  }
  0x1b   :  { %1037 = vmatpush3.xpose.msk.msra.mxu1 %vm394_vm5, %v383_v37 }
  0x1c   :  { %1038 = vmatprep.subr.msk.mxu1 %vm394_vm5, %v382_v38 }
  0x1e   :  { %290 = vperm.xlu1 %1105, %v280_v15   ;;  %214 = vperm.xlu0 %1107, %v204_v12  }
  0x1f   :  { %1039 = vmatpush3.xpose.msk.msra.mxu1 %vm394_vm5, %v382_v38 }
  0x20   :  { %1040 = vmatprep.subr.msk.mxu1 %vm394_vm5, %v381_v39 }
  0x22   :  { %224 = vperm.xlu1 %1105, %v206_v14   ;;  %285 = vperm.xlu0 %1107, %v279_v16  }
  0x23   :  { %1041 = vmatpush3.xpose.msk.msra.mxu1 %vm394_vm5, %v381_v39 }
  0x24   :  { %1042 = vmatprep.subr.msk.mxu1 %vm394_vm5, %v380_v40 }
  0x26   :  { %1108 = vset.pattern.permute.xlu1 %v1163_v10 }
  0x27   :  { %264 = vperm.xlu1 %1108, %v205_v13   ;;  %1043 = vmatpush3.xpose.msk.msra.mxu1 %vm394_vm5, %v380_v40 }
  0x28   :  { %1044 = vmatprep.subr.msk.mxu1 %vm394_vm5, %v379_v41 }
  0x2b   :  { %268 = vperm.xlu1 %1108, %v206_v14   ;;  %1045 = vmatpush3.xpose.msk.msra.mxu1 %vm394_vm5, %v379_v41 }
  0x2c   :  { %1046 = vmatprep.subr.msk.mxu1 %vm394_vm5, %v378_v42 }
  0x2f   :  { %1109 = vset.pattern.permute.xlu1 %v1162_v2  ;;  %1047 = vmatpush3.xpose.msk.msra.mxu1 %vm394_vm5, %v378_v42 }
  0x30   :  { %1048 = vmatprep.subr.msk.mxu1 %vm394_vm5, %v377_v43 }
  0x33   :  { %1049 = vmatpush3.xpose.msk.msra.mxu1 %vm394_vm5, %v377_v43 }
  0x34   :  { %1050 = vmatprep.subr.msk.mxu1 %vm394_vm5, %v376_v44 }
  0x37   :  { %1051 = vmatpush3.xpose.msk.msra.mxu1 %vm394_vm5, %v376_v44 }
  0x38   :  { %1052 = vmatprep.subr.msk.mxu1 %vm394_vm5, %v375_v45 }
  0x3b   :  { %1053 = vmatpush3.xpose.msk.msra.mxu1 %vm394_vm5, %v375_v45 }
  0x3c   :  { %1054 = vmatprep.subr.msk.mxu1 %vm394_vm5, %v374_v46 }
  0x3f   :  { %1055 = vmatpush3.xpose.msk.msra.mxu1 %vm394_vm5, %v374_v46 }
  0x40   :  { %1056 = vmatprep.subr.msk.mxu1 %vm394_vm5, %v373_v47 }
  0x43   :  { %1057 = vmatpush3.xpose.msk.msra.mxu1 %vm394_vm5, %v373_v47 }
  0x44   :  { %1058 = vmatprep.subr.msk.mxu1 %vm394_vm5, %v372_v48 }
  0x47   :  { %1059 = vmatpush3.xpose.msk.msra.mxu1 %vm394_vm5, %v372_v48 }
  0x7d   :  { %v41_v19 = vpop.permute.xlu0 %40  ;;  %v47_v20 = vpop.permute.xlu1 %46 }
  0x7e   :  { %vm51_vm1 = vcmp.eq.s32.totalorder %v41_v19, %v1265_v18  ;;  %vm53_vm2 = vcmp.eq.s32.totalorder %v47_v20, %v1265_v18 }
  0x7f   :  { %v941_v22 = vsel %vm51_vm1, 1.0, %v1165_v21  ;;  %v943_v25 = vsel %vm53_vm2, 1.0, %v1165_v21 }
  0x80   :  { %1024 = vmatprep.mubr.msk.f32.mxu0 %vm67_vm0, %v941_v22  ;;  %v371_v22 = vld [vmem:[%s1464_s5] sm:$0xff] }
  0x81   :  { %v44_v23 = vpop.permute.xlu0 %43  ;;  %v50_v24 = vpop.permute.xlu1 %49  ;;  %1060 = vmatprep.subr.msk.mxu1 %vm394_vm5, %v371_v22 }
  0x82   :  { %vm52_vm3 = vcmp.eq.s32.totalorder %v44_v23, %v1265_v18  ;;  %vm54_vm4 = vcmp.eq.s32.totalorder %v50_v24, %v1265_v18  ;;  %1061 = vmatpush3.xpose.msk.msra.mxu1 %vm394_vm5, %v371_v22 }
  0x83   :  { %v942_v26 = vsel %vm52_vm3, 1.0, %v1165_v21  ;;  %v944_v27 = vsel %vm54_vm4, 1.0, %v1165_v21 }
  0x84   :  { %1025 = vmatmul.mubr.msk.f32.vlgmr.msra.gmra.mxu0 %vm67_vm0, %v942_v26 }
  0x85   :  { %1027 = vmatprep.mubr.msk.f32.mxu0 %vm67_vm0, %v943_v25 }
  0x87   :  { %v233_v49 = vpop.permute.xlu1 %232  ;;  %v257_v51 = vpop.permute.xlu0 %256 }
  0x88   :  { %1028 = vmatmul.mubr.msk.f32.gmra.mxu0 %vm67_vm0, %v944_v27 }
  0x8b   :  { %v237_v50 = vpop.permute.xlu1 %236 }
  0x8c   :  { %v241_v53 = vpop.permute.xlu0 %240 }
  0x90   :  { %v261_v52 = vpop.permute.xlu1 %260  ;;  %v245_v55 = vpop.permute.xlu0 %244 }
  0x95   :  { %v220_v54 = vpop.permute.xlu1 %219  ;;  %v210_v57 = vpop.permute.xlu0 %209 }
  0x99   :  { %v291_v56 = vpop.permute.xlu1 %290  ;;  %v215_v59 = vpop.permute.xlu0 %214 }
  0x9d   :  { %v225_v58 = vpop.permute.xlu1 %224  ;;  %v286_v61 = vpop.permute.xlu0 %285 }
  0xa2   :  { %v265_v60 = vpop.permute.xlu1 %264 }
  0xa6   :  { %v269_v62 = vpop.permute.xlu1 %268 }
 0x144   :  { %v1275_v28 = vpop.f32.mrf.mxu0 }
 0x145   :  { %188 = vrot.lane.b32.xlu1 %v1275_v28, %s1166_s3  ;;  %171 = vrot.lane.b32.xlu0 %v1275_v28, %s1167_s14  ;;  %v248_v7 = vmul.f32 %v1275_v28, %v237_v50 }
 0x146   :  { %v1279_v29 = vpop.f32.mrf.mxu0 }
 0x147   :  { %v247_v8 = vmul.f32 %v233_v49, %v1279_v29 }
 0x148   :  { %v1281_v30 = vpop.f32.mrf.mxu0 }
 0x149   :  { %169 = vrot.lane.b32.xlu1 %v1279_v29, %s1167_s14  ;;  %175 = vrot.lane.b32.xlu0 %v1281_v30, %s1167_s14  ;;  %v250_v40 = vmul.f32 %v1281_v30, %v245_v55 }
 0x14a   :  { %v1285_v31 = vpop.f32.mrf.mxu0 }
 0x14b   :  { %v249_v26 = vmul.f32 %v241_v53, %v1285_v31  ;;  %v580_v53 = vld [vmem:[%s1466_s7] sm:$0xff] }
 0x14d   :  { %186 = vrot.lane.b32.xlu1 %v1279_v29, %s1166_s3  ;;  %173 = vrot.lane.b32.xlu0 %v1285_v31, %s1167_s14 }
 0x151   :  { %192 = vrot.lane.b32.xlu1 %v1281_v30, %s1166_s3  ;;  %295 = vperm.xlu0 %1107, %v281_v32  }
 0x155   :  { %190 = vrot.lane.b32.xlu1 %v1285_v31, %s1166_s3 }
 0x159   :  { %300 = vperm.xlu1 %1109, %v282_v33  }
 0x1b7   :  { %v189_v63 = vpop.permute.xlu1 %188  ;;  %v172_v0 = vpop.permute.xlu0 %171 }
 0x1b8   :  { %v183_v1 = vsel %vm181_vm6, 0.0, %v172_v0  ;;  %v200_v11 = vsel %vm198_vm7, %v189_v63, 0.0 }
 0x1b9   :  { %v228_v5 = vmul.f32 %v215_v59, %v183_v1  ;;  %v272_v19 = vmul.f32 %v261_v52, %v200_v11  ;;  %v581_v52 = vld [vmem:[%s1466_s7 + $0x8] sm:$0xff] }
 0x1ba   :  { %1074 = vmatprep.subr.mxu0 %v581_v52 }
 0x1bb   :  { %v170_v2 = vpop.permute.xlu1 %169  ;;  %v176_v3 = vpop.permute.xlu0 %175  ;;  %v252_v13 = vadd.f32 %v248_v7, %v228_v5  ;;  %1075 = vmatpush3.xpose.msra.mxu0 %v581_v52 }
 0x1bc   :  { %v182_v4 = vsel %vm181_vm6, 0.0, %v170_v2  ;;  %v185_v34 = vsel %vm181_vm6, 0.0, %v176_v3  ;;  %1076 = vmatprep.subr.mxu0 %v580_v53 }
 0x1bd   :  { %v227_v6 = vmul.f32 %v210_v57, %v182_v4  ;;  %v276_v23 = vadd.f32 %v272_v19, %v252_v13  ;;  %v230_v38 = vmul.f32 %v225_v58, %v185_v34 }
 0x1bf   :  { %v187_v9 = vpop.permute.xlu1 %186  ;;  %v174_v10 = vpop.permute.xlu0 %173  ;;  %v251_v14 = vadd.f32 %v247_v8, %v227_v6  ;;  %v304_v33 = vadd.f32 %v291_v56, %v276_v23  ;;  %v254_v31 = vadd.f32 %v250_v40, %v230_v38  ;;  %1077 = vmatpush3.xpose.msra.mxu0 %v580_v53 }
 0x1c0   :  { %v199_v12 = vsel %vm198_vm7, %v187_v9, 0.0  ;;  %v184_v16 = vsel %vm181_vm6, 0.0, %v174_v10 }
 0x1c1   :  { %v271_v15 = vmul.f32 %v257_v51, %v199_v12  ;;  %v229_v24 = vmul.f32 %v220_v54, %v184_v16  ;;  %v949_v54 = vld [vmem:[%s1465_s6] ss:$0 sm:$0xff] }
 0x1c3   :  { %v275_v20 = vadd.f32 %v271_v15, %v251_v14  ;;  %v193_v21 = vpop.permute.xlu1 %192  ;;  %v253_v29 = vadd.f32 %v249_v26, %v229_v24 }
 0x1c4   :  { %v202_v36 = vsel %vm198_vm7, %v193_v21, 0.0 }
 0x1c5   :  { %v303_v25 = vadd.f32 %v286_v61, %v275_v20  ;;  %v274_v41 = vmul.f32 %v269_v62, %v202_v36 }
 0x1c7   :  { %v191_v27 = vpop.permute.xlu1 %190  ;;  %307 = vxpose.xlu0.b32.start [1/2] (short) (narrow) %v303_v25, 32  ;;  %v278_v42 = vadd.f32 %v274_v41, %v254_v31  ;;  %v795_v25 = vld [vmem:[%s1460_s1] sm:$0xff] }
 0x1c8   :  { %v201_v28 = vsel %vm198_vm7, %v191_v27, 0.0 }
 0x1c9   :  { %v273_v32 = vmul.f32 %v265_v60, %v201_v28  ;;  %v796_v28 = vld [vmem:[%s1460_s1 + $0x8] sm:$0xff] }
 0x1cb   :  { %308 = vxpose.xlu0.b32.end [2/2] (short) (narrow) %v304_v33, 32  ;;  %v277_v35 = vadd.f32 %v273_v32, %v253_v29 }
 0x1cc   :  { %v296_v37 = vpop.permute.xlu0 %295 }
 0x1cd   :  { %v305_v39 = vadd.f32 %v296_v37, %v277_v35  ;;  %v797_v35 = vld [vmem:[%s1460_s1 + $0x10] sm:$0xff] }
 0x1cf   :  { %339 = vxpose.xlu1.b32.start [1/2] (short) (narrow) %v305_v39, 32  ;;  %v798_v39 = vld [vmem:[%s1460_s1 + $0x18] sm:$0xff]  ;;  %s1168_s1 = smov [#allocation2]  }
 0x1d0   :  { %s916_s13 = sshll.u32 %s1168_s1, 4  ;;  %s917_s13 = int_to_ptr.vmem [resolvable:$true] %s916_s13 }
 0x1d1   :  { %s1118_s3 = scalar_lea.vmem %s917_s13, 512  ;;  %p1123_p1 = scmp.lt.s32.totalorder %s917_s13, %s917_s13 }
 0x1d2   :  { %p1119_p0 = scmp.ne.s32.totalorder %s917_s13, %s1118_s3  ;;  %p1124_p2 = scmp.lt.s32.totalorder %s1118_s3, %s1118_s3 }
 0x1d4   :  { %v301_v43 = vpop.permute.xlu1 %300  ;;  %p1125_p3 = por %p1124_p2, %p1123_p1 }
 0x1d5   :  { %v306_v44 = vadd.f32 %v301_v43, %v278_v42 }
 0x1d6   :  { %p1126_p4 = pnand %p1125_p3, %p1119_p0 }
 0x1d7   :  { %340 = vxpose.xlu1.b32.end [2/2] (short) (narrow) %v306_v44, 32 }
 0x243   :  { %v323_v45 = vpop.trf.xlu0 }
 0x244   :  { %1062 = vmatprep.mubr.msk.f32.mxu1 %vm394_vm5, %v323_v45 }
 0x247   :  { %v324_v46 = vpop.trf.xlu0 }
 0x248   :  { %1063 = vmatmul.mubr.msk.f32.vlgmr.msra.gmra.mxu1 %vm394_vm5, %v324_v46 }
 0x24b   :  { %v325_v47 = vpop.trf.xlu0 }
 0x24c   :  { %1065 = vmatprep.mubr.msk.f32.mxu1 %vm394_vm5, %v325_v47 }
 0x24f   :  { %v355_v48 = vpop.trf.xlu1  ;;  %v326_v49 = vpop.trf.xlu0 }
 0x250   :  { %1066 = vmatmul.mubr.msk.f32.gmra.mxu1 %vm394_vm5, %v326_v49 }
 0x251   :  { %1068 = vmatprep.mubr.msk.f32.mxu1 %vm394_vm5, %v355_v48 }
 0x253   :  { %v356_v30 = vpop.trf.xlu1 }
 0x254   :  { %1069 = vmatmul.mubr.msk.f32.gmra.mxu1 %vm394_vm5, %v356_v30 }
 0x257   :  { %v357_v50 = vpop.trf.xlu1 }
 0x258   :  { %1071 = vmatprep.mubr.msk.f32.mxu1 %vm394_vm5, %v357_v50 }
 0x25b   :  { %v358_v51 = vpop.trf.xlu1 }
 0x25c   :  { %1072 = vmatmul.mubr.msk.f32.gmra.mxu1 %vm394_vm5, %v358_v51 }
 0x308   :  { %v1064_v55 = vpop.f32.mrf.mxu1 }
 0x309   :  { %v539_v56 = vadd.f32 %v1064_v55, %v949_v54 }
 0x30a   :  { %v533_v57 = vpop.f32.mrf.mxu1 }
 0x30b   :  { %v534_v58 = vadd.f32 %v949_v54, %v533_v57  ;;  %v573_v60 = vmax.f32 %v539_v56, 0.0 }
 0x30d   :  { %v572_v59 = vmax.f32 %v534_v58, 0.0 }
 0x30f   :  { %1078 = vmatprep.mubr.f32.mxu0 %v572_v59 }
 0x310   :  { %v1067_v61 = vpop.f32.mrf.mxu1  ;;  %1079 = vmatmul.mubr.f32.vlgmr.msra.gmra.mxu0 %v573_v60 }
 0x311   :  { %v549_v62 = vadd.f32 %v1067_v61, %v949_v54 }
 0x312   :  { %v543_v63 = vpop.f32.mrf.mxu1 }
 0x313   :  { %v544_v0 = vadd.f32 %v949_v54, %v543_v63  ;;  %v575_v3 = vmax.f32 %v549_v62, 0.0 }
 0x314   :  { %v1070_v1 = vpop.f32.mrf.mxu1 }
 0x315   :  { %v574_v2 = vmax.f32 %v544_v0, 0.0  ;;  %v559_v4 = vadd.f32 %v1070_v1, %v949_v54 }
 0x316   :  { %v553_v5 = vpop.f32.mrf.mxu1 }
 0x317   :  { %v554_v6 = vadd.f32 %v949_v54, %v553_v5  ;;  %1081 = vmatprep.mubr.f32.mxu0 %v574_v2  ;;  %v577_v8 = vmax.f32 %v559_v4, 0.0 }
 0x318   :  { %1082 = vmatmul.mubr.f32.gmra.mxu0 %v575_v3 }
 0x319   :  { %v576_v7 = vmax.f32 %v554_v6, 0.0 }
 0x31b   :  { %1084 = vmatprep.mubr.f32.mxu0 %v576_v7 }
 0x31c   :  { %v1073_v9 = vpop.f32.mrf.mxu1  ;;  %1085 = vmatmul.mubr.f32.gmra.mxu0 %v577_v8 }
 0x31d   :  { %v569_v10 = vadd.f32 %v1073_v9, %v949_v54 }
 0x31e   :  { %v563_v11 = vpop.f32.mrf.mxu1 }
 0x31f   :  { %v564_v12 = vadd.f32 %v949_v54, %v563_v11  ;;  %v579_v14 = vmax.f32 %v569_v10, 0.0 }
 0x321   :  { %v578_v13 = vmax.f32 %v564_v12, 0.0 }
 0x323   :  { %1087 = vmatprep.mubr.f32.mxu0 %v578_v13 }
 0x324   :  { %1088 = vmatmul.mubr.f32.gmra.mxu0 %v579_v14 }
 0x3d0   :  { %v1080_v15 = vpop.f32.mrf.mxu0 }
 0x3d2   :  { %v648_v16 = vpop.f32.mrf.mxu0 }
 0x3d3   :  { %687 = vxpose.xlu0.b32.start [1/4] (short) (narrow) %v648_v16, 16 }
 0x3d7   :  { %688 = vxpose.xlu0.b32.cont [2/4] (short) (narrow) %v1080_v15, 16 }
 0x3d8   :  { %v1083_v19 = vpop.f32.mrf.mxu0 }
 0x3da   :  { %v658_v20 = vpop.f32.mrf.mxu0 }
 0x3db   :  { %689 = vxpose.xlu0.b32.cont [3/4] (short) (narrow) %v658_v20, 16 }
 0x3dc   :  { %v1086_v21 = vpop.f32.mrf.mxu0 }
 0x3de   :  { %v668_v22 = vpop.f32.mrf.mxu0 }
 0x3df   :  { %690 = vxpose.xlu0.b32.end [4/4] (short) (narrow) %v1083_v19, 16  ;;  %719 = vxpose.xlu1.b32.start [1/4] (short) (narrow) %v668_v22, 16 }
 0x3e3   :  { %720 = vxpose.xlu1.b32.cont [2/4] (short) (narrow) %v1086_v21, 16 }
 0x3e4   :  { %v1089_v23 = vpop.f32.mrf.mxu0 }
 0x3e6   :  { %v678_v24 = vpop.f32.mrf.mxu0 }
 0x3e7   :  { %721 = vxpose.xlu1.b32.cont [3/4] (short) (narrow) %v678_v24, 16 }
 0x3eb   :  { %722 = vxpose.xlu1.b32.end [4/4] (short) (narrow) %v1089_v23, 16 }
 0x44f   :  { %v703_v26 = vpop.trf.xlu0 }
 0x450   :  { %751 = vst.msk [vmem:[#allocation2] sm:$0xff] %vm67_vm0, %v703_v26  ;;  %v799_v27 = vadd.f32 %v795_v25, %v703_v26  ;;  %v755_v36 = vsel %vm67_vm0, %v703_v26, -inf }
 0x452   :  { %v803_v29 = vsel %vm67_vm0, %v799_v27, -inf }
 0x453   :  { %804 = vmax.xlane.f32.xlu0 %v803_v29  ;;  %v704_v32 = vpop.trf.xlu0 }
 0x454   :  { %752 = vst.msk [vmem:[#allocation2 + $0x8] sm:$0xff] %vm67_vm0, %v704_v32  ;;  %v800_v33 = vadd.f32 %v796_v28, %v704_v32  ;;  %v758_v44 = vsel %vm67_vm0, %v704_v32, -inf }
 0x456   :  { %v806_v34 = vsel %vm67_vm0, %v800_v33, -inf }
 0x457   :  { %807 = vmax.xlane.f32.xlu1 %v806_v34 }
 0x45b   :  { %756 = vmax.xlane.f32.xlu1 %v755_v36  ;;  %v1420_v37 = vpop.trf.xlu1 }
 0x45c   :  { %753 = vst.msk [vmem:[#allocation2 + $0x10] sm:$0xff] %vm67_vm0, %v1420_v37  ;;  %v801_v38 = vadd.f32 %v797_v35, %v1420_v37  ;;  %v761_v41 = vsel %vm67_vm0, %v1420_v37, -inf }
 0x45e   :  { %v809_v40 = vsel %vm67_vm0, %v801_v38, -inf }
 0x45f   :  { %810 = vmax.xlane.f32.xlu0 %v809_v40  ;;  %762 = vmax.xlane.f32.xlu1 %v761_v41  ;;  %v736_v31 = vpop.trf.xlu1 }
 0x460   :  { %754 = vst.msk [vmem:[#allocation2 + $0x18] sm:$0xff] %vm67_vm0, %v736_v31  ;;  %v802_v42 = vadd.f32 %v798_v39, %v736_v31  ;;  %v764_v45 = vsel %vm67_vm0, %v736_v31, -inf }
 0x462   :  { %v812_v43 = vsel %vm67_vm0, %v802_v42, -inf }
 0x463   :  { %813 = vmax.xlane.f32.xlu0 %v812_v43 }
 0x467   :  { %759 = vmax.xlane.f32.xlu0 %v758_v44 }
 0x46b   :  { %765 = vmax.xlane.f32.xlu0 %v764_v45 }
 0x4dc   :  { %v805_v46 = vpop.xlane.xlu0 %804 }
 0x4dd   :  { %vm815_vm8 = vcmp.ge.f32.partialorder %v799_v27, %v805_v46 }
 0x4de   :  { %v819_v47 = vsel %vm815_vm8, %v1265_v18, 32 }
 0x4df   :  { %v823_v48 = vsel %vm67_vm0, %v819_v47, 2147483647 }
 0x4e0   :  { %v808_v49 = vpop.xlane.xlu1 %807  ;;  %v825_v30 = vshra.s32 %v823_v48, 16  ;;  %v824_v14 = vand.u32 65535, %v823_v48 }
 0x4e1   :  { %vm816_vm9 = vcmp.ge.f32.partialorder %v800_v33, %v808_v49 }
 0x4e2   :  { %v820_v50 = vsel %vm816_vm9, %v1265_v18, 32  ;;  %v827_v51 = vcvt.s32.f32 %v825_v30  ;;  %v826_v20 = vcvt.s32.f32 %v824_v14 }
 0x4e3   :  { %v838_v52 = vsel %vm67_vm0, %v820_v50, 2147483647 }
 0x4e4   :  { %828 = vmin.xlane.f32.xlu1 %v827_v51  ;;  %v757_v53 = vpop.xlane.xlu1 %756  ;;  %v840_v54 = vshra.s32 %v838_v52, 16  ;;  %v839_v21 = vand.u32 65535, %v838_v52 }
 0x4e5   :  { %v767_v55 = vsub.f32 %v703_v26, %v757_v53 }
 0x4e6   :  { %v842_v56 = vcvt.s32.f32 %v840_v54  ;;  %v841_v25 = vcvt.s32.f32 %v839_v21 }
 0x4e7   :  { %v771_v57 = vmul.f32 1.442695, %v767_v55 }
 0x4e8   :  { %v811_v58 = vpop.xlane.xlu0 %810  ;;  %843 = vmin.xlane.f32.xlu0 %v842_v56  ;;  %v763_v11 = vpop.xlane.xlu1 %762 }
 0x4e9   :  { %1110 = vpow2.f32 %v771_v57  ;;  %vm817_vm10 = vcmp.ge.f32.partialorder %v801_v38, %v811_v58  ;;  %v769_v12 = vsub.f32 %v1420_v37, %v763_v11 }
 0x4ea   :  { %v821_v59 = vsel %vm817_vm10, %v1265_v18, 32 }
 0x4eb   :  { %v853_v60 = vsel %vm67_vm0, %v821_v59, 2147483647  ;;  %v775_v15 = vmul.f32 1.442695, %v769_v12 }
 0x4ec   :  { %v814_v61 = vpop.xlane.xlu0 %813  ;;  %v855_v62 = vshra.s32 %v853_v60, 16  ;;  %v854_v27 = vand.u32 65535, %v853_v60 }
 0x4ed   :  { %vm818_vm11 = vcmp.ge.f32.partialorder %v802_v42, %v814_v61 }
 0x4ee   :  { %v822_v63 = vsel %vm818_vm11, %v1265_v18, 32  ;;  %v857_v0 = vcvt.s32.f32 %v855_v62  ;;  %v856_v29 = vcvt.s32.f32 %v854_v27 }
 0x4ef   :  { %v868_v1 = vsel %vm67_vm0, %v822_v63, 2147483647 }
 0x4f0   :  { %858 = vmin.xlane.f32.xlu1 %v857_v0  ;;  %v760_v2 = vpop.xlane.xlu0 %759  ;;  %v870_v3 = vshra.s32 %v868_v1, 16 }
 0x4f1   :  { %v768_v4 = vsub.f32 %v704_v32, %v760_v2  ;;  %v869_v32 = vand.u32 65535, %v868_v1 }
 0x4f2   :  { %v872_v5 = vcvt.s32.f32 %v870_v3 }
 0x4f3   :  { %v773_v6 = vmul.f32 1.442695, %v768_v4  ;;  %v871_v36 = vcvt.s32.f32 %v869_v32 }
 0x4f4   :  { %873 = vmin.xlane.f32.xlu0 %v872_v5  ;;  %v766_v13 = vpop.xlane.xlu0 %765 }
 0x4f5   :  { %1112 = vpow2.f32 %v773_v6  ;;  %v770_v16 = vsub.f32 %v736_v31, %v766_v13 }
 0x4f6   :  { %v1111_v7 = vpop.eup %1110  ;;  %1114 = vpow2.f32 %v775_v15 }
 0x4f7   :  { %v779_v8 = vsel %vm67_vm0, %v1111_v7, 0.0  ;;  %v777_v22 = vmul.f32 1.442695, %v770_v16 }
 0x4f8   :  { %780 = vadd.xlane.f32.xlu1 %v779_v8 }
 0x4f9   :  { %1116 = vpow2.f32 %v777_v22 }
 0x502   :  { %v1113_v9 = vpop.eup %1112 }
 0x503   :  { %v782_v10 = vsel %vm67_vm0, %v1113_v9, 0.0  ;;  %v1115_v34 = vpop.eup %1114 }
 0x504   :  { %783 = vadd.xlane.f32.xlu0 %v782_v10  ;;  %v785_v38 = vsel %vm67_vm0, %v1115_v34, 0.0 }
 0x506   :  { %v1117_v39 = vpop.eup %1116 }
 0x507   :  { %v788_v40 = vsel %vm67_vm0, %v1117_v39, 0.0 }
 0x56d   :  { %v829_v19 = vpop.xlane.xlu1 %828 }
 0x56e   :  { %vm830_vm12 = vcmp.eq.f32.partialorder %v827_v51, %v829_v19 }
 0x56f   :  { %v831_v23 = vsel %vm830_vm12, %v826_v20, inf }
 0x570   :  { %832 = vmin.xlane.f32.xlu1 %v831_v23 }
 0x571   :  { %v844_v24 = vpop.xlane.xlu0 %843 }
 0x572   :  { %vm845_vm13 = vcmp.eq.f32.partialorder %v842_v56, %v844_v24 }
 0x573   :  { %v846_v26 = vsel %vm845_vm13, %v841_v25, inf }
 0x574   :  { %847 = vmin.xlane.f32.xlu0 %v846_v26 }
 0x579   :  { %v859_v28 = vpop.xlane.xlu1 %858 }
 0x57a   :  { %vm860_vm14 = vcmp.eq.f32.partialorder %v857_v0, %v859_v28 }
 0x57b   :  { %v861_v33 = vsel %vm860_vm14, %v856_v29, inf }
 0x57c   :  { %862 = vmin.xlane.f32.xlu1 %v861_v33 }
 0x57d   :  { %v874_v35 = vpop.xlane.xlu0 %873 }
 0x57e   :  { %vm875_vm15 = vcmp.eq.f32.partialorder %v872_v5, %v874_v35 }
 0x57f   :  { %v876_v37 = vsel %vm875_vm15, %v871_v36, inf }
 0x580   :  { %877 = vmin.xlane.f32.xlu0 %v876_v37  ;;  %786 = vadd.xlane.f32.xlu1 %v785_v38 }
 0x584   :  { %789 = vadd.xlane.f32.xlu0 %v788_v40 }
 0x585   :  { %1129 = shalt.err (!%p1126_p4)
}
 0x586   :  { %s1169_s14 = smov 128   ;;  %s1170_s15 = smov 8   ;;  %v781_v41 = vpop.xlane.xlu1 %780  ;;  %v835_v31 = vcvt.f32.s32 %v829_v19  ;;  %v850_v45 = vcvt.f32.s32 %v844_v24  ;;  %v888_v47 = vshrl.u32 %v37_v17, 7  ;;  %v891_v48 = vadd.s32 4294967288, %v1265_v18 }
 0x587   :  { %922 = dma.vmem_to_hbm [thread:$0]  %s917_s13, 512, %s1467_s8, [#allocation3], %s1169_s14, %s1169_s14, %s1170_s15   ;;  %vm791_vm0 = vcmp.lt.f32.partialorder %v781_v41, 1.1111112  ;;  %vm896_vm2 = vcmask 130112   ;;  %v865_v57 = vcvt.f32.s32 %v859_v28  ;;  %v880_v61 = vcvt.f32.s32 %v874_v35 }
 0x588   :  { %v836_v44 = vshll.u32 %v835_v31, 16  ;;  %v851_v50 = vshll.u32 %v850_v45, 16  ;;  %v889_v52 = vsub.s32 %v1265_v18, %v888_v47  ;;  %v894_v53 = vsub.s32 %v891_v48, %v888_v47  ;;  %s1171_s8 = smov [#allocation4]  }
 0x589   :  { %v866_v63 = vshll.u32 %v865_v57, 16  ;;  %v881_v3 = vshll.u32 %v880_v61, 16  ;;  %s929_s18 = sshll.u32 %s1171_s8, 4  ;;  %vm907_vm5 = vcmask 1041409   ;;  %vm909_vm6 = vcmask 123904   ;;  %s930_s18 = int_to_ptr.vmem [resolvable:$true] %s929_s18 }
 0x58a   :  { %s1138_s19 = scalar_lea.vmem %s930_s18, 32  ;;  %p1143_p6 = scmp.lt.s32.totalorder %s930_s18, %s930_s18 }
 0x58b   :  { %p1139_p5 = scmp.ne.s32.totalorder %s930_s18, %s1138_s19  ;;  %p1144_p7 = scmp.lt.s32.totalorder %s1138_s19, %s1138_s19 }
 0x58d   :  { %v784_v42 = vpop.xlane.xlu0 %783  ;;  %p1145_p8 = por %p1144_p7, %p1143_p6 }
 0x58e   :  { %vm792_vm1 = vcmp.lt.f32.partialorder %v784_v42, 1.1111112 }
 0x58f   :  { %p1146_p9 = pnand %p1145_p8, %p1139_p5 }
 0x5f9   :  { %v833_v43 = vpop.xlane.xlu1 %832 }
 0x5fa   :  { %v834_v46 = vcvt.f32.s32 %v833_v43 }
 0x5fc   :  { %v837_v49 = vadd.s32 %v836_v44, %v834_v46 }
 0x5fd   :  { %v848_v30 = vpop.xlane.xlu0 %847 }
 0x5fe   :  { %v849_v51 = vcvt.f32.s32 %v848_v30  ;;  %v883_v54 = vsel %vm791_vm0, %v837_v49, 0 }
 0x5ff   :  { %v890_v58 = vrot.slane %v883_v54, %v889_v52 }
 0x600   :  { %v852_v55 = vadd.s32 %v851_v50, %v849_v51 }
 0x602   :  { %v884_v56 = vsel %vm792_vm1, %v852_v55, 0 }
 0x603   :  { %v895_v59 = vrot.slane %v884_v56, %v894_v53 }
 0x605   :  { %v863_v60 = vpop.xlane.xlu1 %862  ;;  %v897_v17 = vsel %vm896_vm2, %v895_v59, %v890_v58 }
 0x606   :  { %v864_v62 = vcvt.f32.s32 %v863_v60 }
 0x608   :  { %v867_v0 = vadd.s32 %v866_v63, %v864_v62 }
 0x609   :  { %v878_v1 = vpop.xlane.xlu0 %877  ;;  %v787_v2 = vpop.xlane.xlu1 %786 }
 0x60a   :  { %v879_v18 = vcvt.f32.s32 %v878_v1  ;;  %vm793_vm3 = vcmp.lt.f32.partialorder %v787_v2, 1.1111112 }
 0x60b   :  { %v885_v5 = vsel %vm793_vm3, %v867_v0, 0 }
 0x60c   :  { %v882_v4 = vadd.s32 %v881_v3, %v879_v18  ;;  %v901_v8 = vrot.slane %v885_v5, %v889_v52 }
 0x60d   :  { %v790_v6 = vpop.xlane.xlu0 %789 }
 0x60e   :  { %vm794_vm4 = vcmp.lt.f32.partialorder %v790_v6, 1.1111112 }
 0x60f   :  { %v886_v7 = vsel %vm794_vm4, %v882_v4, 0 }
 0x610   :  { %v905_v9 = vrot.slane %v886_v7, %v894_v53 }
 0x612   :  { %v906_v10 = vsel %vm896_vm2, %v905_v9, %v901_v8 }
 0x613   :  { %v908_v11 = vsel %vm907_vm5, %v906_v10, %v897_v17 }
 0x614   :  { %910 = vst.msk [vmem:[#allocation4] sm:$0x3] %vm909_vm6, %v908_v11 }
 0x615   :  { %1149 = shalt.err (!%p1146_p9)
}
 0x616   :  { %932 = dma.vmem_to_hbm [thread:$0]  %s930_s18, 32, %s1468_s9, [#allocation5]  }
 0x617   :  { %1158 = dma.done.wait [#allocation3], 512  }
 0x618   :  { %1159 = vsyncadd [#allocation3], 4294966784 }
 0x619   :  { %1160 = dma.done.wait [#allocation5], 32  }
 0x61a   :  { %1161 = vsyncadd [#allocation5], 4294967264 }
 0x61b   :  { %939 = vsyncpa [#allocation3], 1 }
 0x61c   :  { %940 = vsyncpa [#allocation5], 1 }

</bundles_post_ra>
